<compile_context>
chip_gen: v6e
topology: v6e:2x2x1
jax: 0.10.0
libtpu: 0.0.40
codegen_flags: <defaults>
</compile_context>

<pallas_src>
import functools

import jax
import jax.numpy as jnp
from jax.experimental import pallas as pl
from jax.experimental.pallas import tpu as pltpu


def _round_up(x: int, m: int) -> int:
    return ((x + m - 1) // m) * m


# ---------------------------------------------------------------------------
# Kernels
# ---------------------------------------------------------------------------

def _resident_kernel(*refs, add_fixation: bool):
    """Weight fully VMEM-resident.  x is f32; cast to the MXU dtype in-kernel."""
    if add_fixation:
        x_ref, w_ref, f_ref, o_ref = refs
    else:
        x_ref, w_ref, o_ref = refs
        f_ref = None
    x = x_ref[...].astype(w_ref.dtype)                       # in-kernel VPU cast
    acc = jnp.dot(x, w_ref[...], preferred_element_type=jnp.float32)
    if add_fixation:
        acc = acc + f_ref[...]                               # f32 bias add
    o_ref[...] = acc.astype(o_ref.dtype)


def _ktiled_kernel(*refs, add_fixation: bool):
    """K(=SP)-tiled fallback for large SP*O (v7x 64 MiB VMEM): f32 accumulator
    scratch, init on k==0, bias-add + store on the last k step."""
    if add_fixation:
        x_ref, w_ref, f_ref, o_ref, acc_ref = refs
    else:
        x_ref, w_ref, o_ref, acc_ref = refs
        f_ref = None
    k = pl.program_id(1)

    @pl.when(k == 0)
    def _():
        acc_ref[...] = jnp.zeros_like(acc_ref)

    x = x_ref[...].astype(w_ref.dtype)
    acc_ref[...] += jnp.dot(x, w_ref[...], preferred_element_type=jnp.float32)

    @pl.when(k == pl.num_programs(1) - 1)
    def _():
        acc = acc_ref[...]
        if add_fixation:
            acc = acc + f_ref[...]
        o_ref[...] = acc.astype(o_ref.dtype)


# ---------------------------------------------------------------------------
# Tiling heuristics
# ---------------------------------------------------------------------------

def _pick_batch_tile(B: int, batch_block: int) -> int:
    """Batch tile: multiple of 8 (f32 sublanes), <= B.  Prefers >=2 grid blocks
    when the batch allows it so ("parallel",) feeds both TensorCores on v7x."""
    if B <= 8:
        return B                       # single block == full (tiny) batch dim
    tm = min(batch_block, (B // 8) * 8)
    if B >= 16:
        tm = min(tm, _round_up(-(-B // 2), 8))   # keep at least 2 grid blocks
    return max(8, tm)


def _pick_k_tile(SP: int, O: int, itemsize: int, budget_bytes: int):
    """Largest multiple of 128 dividing SP whose double-buffered weight block
    (2 * tk * O * itemsize) fits the budget.  None -> no valid tiling."""
    if SP % 128 != 0:
        return None
    max_tk = max(128, (budget_bytes // (2 * O * itemsize)) // 128 * 128)
    tk = min(max_tk, SP)
    tk = max(128, (tk // 128) * 128)
    while tk > 128 and SP % tk != 0:
        tk -= 128
    if SP % tk != 0:
        return None
    return tk


# ---------------------------------------------------------------------------
# Parameter folding (done once, outside the per-call kernel)
# ---------------------------------------------------------------------------

def fold_params(combining_matrix, input_weight, *, dtype=jnp.bfloat16):
    """(x @ C) @ W == x @ (C @ W) = x @ W_eff.  C and W are fixed per model, so
    this SP*SP*O contraction is paid once in plain JAX, never per forward call.
    NOTE: casting W_eff to bf16 is an intentional precision contract (pass
    dtype=jnp.float32 for an exact-f32 weight path)."""
    w_eff = jnp.dot(
        combining_matrix.astype(jnp.float32),
        input_weight.astype(jnp.float32),
        preferred_element_type=jnp.float32,
    )
    return w_eff.astype(dtype)


# ---------------------------------------------------------------------------
# Forward wrapper
# ---------------------------------------------------------------------------

def stripy_stimulus_combiner(sensory_input, w_eff, fixation_token,
                             add_fixation: bool, *,
                             batch_block: int = 256,
                             out_dtype=jnp.float32,
                             resident_weight_budget_bytes: int = 8 << 20,
                             force_k_tiled: bool = False,
                             k_block: int | None = None,
                             xla_fallback_batch: int = 0):
    """sensory_input: [batch, stim, pop];  w_eff: [stim*pop, output_size].

    For best store throughput output_size should be a multiple of 128
    (lane-dense unmasked stores); other sizes work but use masked stores.
    """
    B, S, P = sensory_input.shape
    SP = S * P
    assert w_eff.shape[0] == SP
    O = w_eff.shape[1]
    if add_fixation:
        # identity_project=True with num_stimuli>1 cannot add fixation (O != SP),
        # mirroring the PyTorch module; make it an explicit check here.
        assert fixation_token.size == O, "fixation_token size must equal output size"

    # Row-major flatten == torch.concat over stim per batch item.  Stays f32;
    # the bf16 cast happens inside the kernel (no extra HBM pass).
    x = sensory_input.reshape(B, SP).astype(jnp.float32)

    if B < xla_fallback_batch:
        # Tiny-batch path: the op is pallas_call-dispatch bound, plain XLA dot
        # is as fast and fuses with neighbours.
        out = jnp.dot(x.astype(w_eff.dtype), w_eff,
                      preferred_element_type=jnp.float32)
        if add_fixation:
            out = out + fixation_token.reshape(1, O).astype(jnp.float32)
        return out.astype(out_dtype)

    tm = _pick_batch_tile(B, batch_block)
    nb = pl.cdiv(B, tm)                      # ragged last tile handled by Pallas

    weight_bytes = SP * O * w_eff.dtype.itemsize
    use_ktiled = force_k_tiled or (2 * weight_bytes > resident_weight_budget_bytes)
    tk = None
    if use_ktiled:
        if k_block is not None:
            assert k_block % 128 == 0 and SP % k_block == 0
            tk = k_block
        else:
            tk = _pick_k_tile(SP, O, w_eff.dtype.itemsize,
                              resident_weight_budget_bytes)
        if tk is None:
            use_ktiled = False               # SP not 128-divisible: keep resident

    cost = pl.CostEstimate(
        flops=2 * B * SP * O,
        transcendentals=0,
        bytes_accessed=(B * SP * 4 + weight_bytes
                        + (O * 4 if add_fixation else 0)
                        + B * O * jnp.dtype(out_dtype).itemsize))

    inputs = [x, w_eff]
    if add_fixation:
        inputs.append(fixation_token.reshape(1, O).astype(jnp.float32))

    if not use_ktiled:
        # Fast path: W_eff stays VMEM-resident (constant index_map -> fetched once).
        in_specs = [pl.BlockSpec((tm, SP), lambda i: (i, 0)),
                    pl.BlockSpec((SP, O), lambda i: (0, 0))]
        if add_fixation:
            in_specs.append(pl.BlockSpec((1, O), lambda i: (0, 0)))
        out = pl.pallas_call(
            functools.partial(_resident_kernel, add_fixation=add_fixation),
            out_shape=jax.ShapeDtypeStruct((B, O), out_dtype),
            grid=(nb,),
            in_specs=in_specs,
            out_specs=pl.BlockSpec((tm, O), lambda i: (i, 0)),
            compiler_params=pltpu.CompilerParams(
                dimension_semantics=("parallel",)),
            cost_estimate=cost,
        )(*inputs)
        return out

    # K-tiled fallback (large SP*O, e.g. v7x 64 MiB VMEM): reduce over SP blocks.
    nk = SP // tk
    in_specs = [pl.BlockSpec((tm, tk), lambda i, k: (i, k)),
                pl.BlockSpec((tk, O), lambda i, k: (k, 0))]
    if add_fixation:
        in_specs.append(pl.BlockSpec((1, O), lambda i, k: (0, 0)))
    out = pl.pallas_call(
        functools.partial(_ktiled_kernel, add_fixation=add_fixation),
        out_shape=jax.ShapeDtypeStruct((B, O), out_dtype),
        grid=(nb, nk),
        in_specs=in_specs,
        out_specs=pl.BlockSpec((tm, O), lambda i, k: (i, 0)),
        scratch_shapes=[pltpu.VMEM((tm, O), jnp.float32)],
        compiler_params=pltpu.CompilerParams(
            dimension_semantics=("parallel", "arbitrary")),
        cost_estimate=cost,
    )(*inputs)
    return out


# ---------------------------------------------------------------------------
# Parameter construction mirroring the PyTorch __init__ + references
# ---------------------------------------------------------------------------

def make_params(key, sensory_pop_size, output_size, num_stimuli, alpha,
                identity_project=False):
    assert 0.0 <= alpha <= 1.0
    k_fix, k_w = jax.random.split(key)
    SP = num_stimuli * sensory_pop_size

    fixation_token = (jax.random.normal(k_fix, (output_size,), jnp.float32)
                      / sensory_pop_size)

    id_mat = jnp.eye(SP, dtype=jnp.float32)
    block = jnp.eye(sensory_pop_size, dtype=jnp.float32) / num_stimuli
    block_row = jnp.concatenate([block] * num_stimuli, axis=0)       # [SP, pop]
    stripe_mat = jnp.concatenate([block_row] * num_stimuli, axis=1)  # [SP, SP]
    combining_matrix = alpha * stripe_mat + (1.0 - alpha) * id_mat

    if identity_project:
        assert output_size == sensory_pop_size
        input_weight = jnp.eye(SP, dtype=jnp.float32)
    else:
        bound = jnp.sqrt(6.0 / (SP + output_size))
        input_weight = jax.random.uniform(
            k_w, (SP, output_size), jnp.float32, minval=-bound, maxval=bound)

    return combining_matrix, input_weight, fixation_token


def _reference_f32(sensory_input, combining_matrix, input_weight,
                   fixation_token, add_fixation):
    B, S, P = sensory_input.shape
    x = sensory_input.reshape(B, S * P)
    out = (x @ combining_matrix) @ input_weight
    if add_fixation:
        out = out + fixation_token
    return out


def _reference_bf16(sensory_input, w_eff, fixation_token, add_fixation):
    """Same bf16-operand / f32-accumulate math as the kernel, in plain JAX."""
    B, S, P = sensory_input.shape
    x = sensory_input.reshape(B, S * P).astype(w_eff.dtype)
    out = jnp.dot(x, w_eff, preferred_element_type=jnp.float32)
    if add_fixation:
        out = out + fixation_token.astype(jnp.float32)
    return out


if __name__ == "__main__":
    key = jax.random.PRNGKey(0)
    k_params, k_input = jax.random.split(key)

    sensory_pop_size = 64
    num_stimuli = 4          # SP = 256
    output_size = 128        # lane-dense output
    alpha = 0.3
    batch = 8

    combining_matrix, input_weight, fixation_token = make_params(
        k_params, sensory_pop_size, output_size, num_stimuli, alpha,
        identity_project=False)

    # Fold the static matrices once (parameter-build time, not per call).
    w_eff = fold_params(combining_matrix, input_weight, dtype=jnp.bfloat16)

    sensory_input = jax.random.normal(
        k_input, (batch, num_stimuli, sensory_pop_size), jnp.float32)

    # --- Fast (weight-resident) path, with fixation ------------------------
    out = stripy_stimulus_combiner(sensory_input, w_eff, fixation_token,
                                   add_fixation=True)
    out = jax.block_until_ready(out)
    assert out.shape == (batch, output_size)

    ref_bf16 = _reference_bf16(sensory_input, w_eff, fixation_token, True)
    assert jnp.allclose(out, ref_bf16, atol=2e-3, rtol=2e-3)

    ref_f32 = _reference_f32(sensory_input, combining_matrix, input_weight,
                             fixation_token, True)
    assert jnp.allclose(out, ref_f32, atol=5e-2, rtol=5e-2)

    # --- add_fixation=False variant (no fixation input / DMA) --------------
    out_nf = jax.block_until_ready(
        stripy_stimulus_combiner(sensory_input, w_eff, fixation_token,
                                 add_fixation=False))
    ref_nf = _reference_bf16(sensory_input, w_eff, fixation_token, False)
    assert jnp.allclose(out_nf, ref_nf, atol=2e-3, rtol=2e-3)

    # --- Forced K-tiled path (validates the large-SP*O / v7x fallback) -----
    out_kt = jax.block_until_ready(
        stripy_stimulus_combiner(sensory_input, w_eff, fixation_token,
                                 add_fixation=True,
                                 force_k_tiled=True, k_block=128))
    assert jnp.allclose(out_kt, ref_bf16, atol=2e-3, rtol=2e-3)

    print("KERNEL_OK")
</pallas_src>

<mosaic_0001>
module attributes {stable_mosaic.version = 11 : i64} {
  func.func @_resident_kernel(%arg0: i32, %arg1: memref<8x256xf32, #tpu.memory_space<vmem>>, %arg2: memref<256x128xbf16, #tpu.memory_space<vmem>>, %arg3: memref<1x128xf32, #tpu.memory_space<vmem>>, %arg4: memref<8x128xf32, #tpu.memory_space<vmem>>) attributes {dimension_semantics = [#tpu.dimension_semantics<parallel>], iteration_bounds = array<i64: 1>, scalar_prefetch = 0 : i64, scratch_operands = 0 : i64, tpu.core_type = #tpu.core_type<tc>, window_params = [{transform_indices = @transform_0, window_bounds = array<i64: 8, 256>}, {pipeline_mode = #tpu.pipeline_mode<synchronous>, transform_indices = @transform_1, window_bounds = array<i64: 256, 128>}, {pipeline_mode = #tpu.pipeline_mode<synchronous>, transform_indices = @transform_2, window_bounds = array<i64: 1, 128>}, {transform_indices = @transform_3, window_bounds = array<i64: 8, 128>}]} {
    %c0 = arith.constant 0 : index
    %c0_0 = arith.constant 0 : index
    %0 = vector.load %arg1[%c0, %c0_0] : memref<8x256xf32, #tpu.memory_space<vmem>>, vector<8x256xf32>
    %1 = arith.truncf %0 : vector<8x256xf32> to vector<8x256xbf16>
    %c0_1 = arith.constant 0 : index
    %c0_2 = arith.constant 0 : index
    %2 = vector.load %arg2[%c0_1, %c0_2] : memref<256x128xbf16, #tpu.memory_space<vmem>>, vector<256x128xbf16>
    %cst = arith.constant dense<0.000000e+00> : vector<8x128xf32>
    %3 = tpu.matmul %1, %2, %cst {dimension_numbers = #tpu.dot_dimension_numbers<[1], [0], [0], [1], [0, 0, 1, 1], [], []>} : vector<8x256xbf16>, vector<256x128xbf16>, vector<8x128xf32> -> vector<8x128xf32>
    %c0_3 = arith.constant 0 : index
    %c0_4 = arith.constant 0 : index
    %4 = vector.load %arg3[%c0_3, %c0_4] : memref<1x128xf32, #tpu.memory_space<vmem>>, vector<1x128xf32>
    %5 = vector.broadcast %4 : vector<1x128xf32> to vector<8x128xf32>
    %6 = arith.addf %3, %5 : vector<8x128xf32>
    %c0_5 = arith.constant 0 : index
    %c0_6 = arith.constant 0 : index
    %7 = vector.load %arg4[%c0_5, %c0_6] : memref<8x128xf32, #tpu.memory_space<vmem>>, vector<8x128xf32>
    tpu.vector_store %arg4[%c0_5, %c0_6], %6 {strides = array<i32>} : memref<8x128xf32, #tpu.memory_space<vmem>>, vector<8x128xf32>,
    return
  }
  func.func @transform_0(%arg0: i32) -> (i32, i32) {
    %c0_i32 = arith.constant 0 : i32
    %c0_i32_0 = arith.constant 0 : i32
    return %arg0, %c0_i32 : i32, i32
  }
  func.func @transform_1(%arg0: i32) -> (i32, i32) {
    %c0_i32 = arith.constant 0 : i32
    %c0_i32_0 = arith.constant 0 : i32
    %c0_i32_1 = arith.constant 0 : i32
    return %c0_i32, %c0_i32_0 : i32, i32
  }
  func.func @transform_2(%arg0: i32) -> (i32, i32) {
    %c0_i32 = arith.constant 0 : i32
    %c0_i32_0 = arith.constant 0 : i32
    %c0_i32_1 = arith.constant 0 : i32
    return %c0_i32, %c0_i32_0 : i32, i32
  }
  func.func @transform_3(%arg0: i32) -> (i32, i32) {
    %c0_i32 = arith.constant 0 : i32
    %c0_i32_0 = arith.constant 0 : i32
    return %arg0, %c0_i32 : i32, i32
  }
}

</mosaic_0001>

<bundles_post_ra>
// kernel: tpu_custom_call.1
= control target key start
LH: loop header
LB: loop body
LE: loop exit
PB: predicated region body
PF: predicated region fallthrough
CT: control target
= control target key end

     0   :  { %8 = vsyncpa [#allocation3], 0  ;;  %s401_s0 = inlined_call_operand.hbm [shape: f32[8,256], index: 0, kind: input, shape index: {}]   ;;  %s402_s1 = inlined_call_operand.hbm [shape: bf16[256,128], index: 1, kind: input, shape index: {}]   ;;  %s403_s2 = inlined_call_operand.vmem [shape: f32[1,128], index: 2, kind: input, shape index: {}]   ;;  %s404_s3 = inlined_call_operand.hbm [shape: f32[8,128], index: 3, kind: output, shape index: {}]  }
   0x1   :  { %9 = vsyncpa [#allocation6], 0 }
   0x2   :  { %10 = vsyncpa [#allocation4], 0  ;;  %s364_s12 = smov [#allocation2]   ;;  %s365_s14 = smov [#allocation5]  }
   0x3   :  { %s17_s13 = sshll.u32 %s364_s12, 4  ;;  %s26_s15 = sshll.u32 %s365_s14, 4  ;;  %s18_s13 = int_to_ptr.vmem [resolvable:$true] %s17_s13  ;;  %s27_s15 = int_to_ptr.vmem [resolvable:$true] %s26_s15 }
   0x4   :  { %s306_s16 = scalar_lea.vmem %s18_s13, 256  ;;  %p311_p1 = scmp.lt.s32.totalorder %s18_s13, %s18_s13 }
   0x5   :  { %p307_p0 = scmp.ne.s32.totalorder %s18_s13, %s306_s16  ;;  %p312_p2 = scmp.lt.s32.totalorder %s306_s16, %s306_s16 }
   0x7   :  { %p313_p3 = por %p312_p2, %p311_p1 }
   0x9   :  { %p314_p4 = pnand %p313_p3, %p307_p0 }
   0xb   :  { %317 = shalt.err (!%p314_p4)
}
   0xc   :  { %20 = dma.hbm_to_vmem [thread:$0]  %s401_s0, 256, %s18_s13, [#allocation3]  }
   0xd   :  { %s326_s19 = scalar_lea.vmem %s27_s15, 2048  ;;  %p331_p6 = scmp.lt.s32.totalorder %s27_s15, %s27_s15 }
   0xe   :  { %p327_p5 = scmp.ne.s32.totalorder %s27_s15, %s326_s19  ;;  %p332_p7 = scmp.lt.s32.totalorder %s326_s19, %s326_s19 }
  0x10   :  { %p333_p8 = por %p332_p7, %p331_p6 }
  0x12   :  { %p334_p9 = pnand %p333_p8, %p327_p5 }
  0x14   :  { %337 = shalt.err (!%p334_p9)
}
  0x15   :  { %s366_s20 = smov 64   ;;  %s367_s21 = smov 4  }
  0x16   :  { %32 = dma.hbm_to_vmem [thread:$0]  %s402_s1, 2048, %s27_s15, [#allocation6], %s366_s20, %s366_s20, %s367_s21  }
  0x17   :  { %358 = dma.done.wait [#allocation3], 256  }
  0x18   :  { %359 = vsyncadd [#allocation3], 4294967040 }
  0x19   :  { %360 = dma.done.wait [#allocation6], 2048  }
  0x1a   :  { %361 = vsyncadd [#allocation6], 4294965248  ;;  %v282_v0 = vld [vmem:[#allocation5 + $0x78] sm:$0xff]   ;;  %v284_v2 = vld [vmem:[#allocation5 + $0x70] sm:$0xff]   ;;  %s368_s24 = smov [#allocation7]  }
  0x1b   :  { %v283_v1 = vld [vmem:[#allocation5 + $0x38] sm:$0xff]   ;;  %255 = vmatprep.subr.bf16.mxu0 %v282_v0  ;;  %v285_v3 = vld [vmem:[#allocation5 + $0x30] sm:$0xff]   ;;  %v286_v4 = vld [vmem:[#allocation5 + $0x68] sm:$0xff]   ;;  %s228_s25 = sshll.u32 %s368_s24, 4  ;;  %s229_s25 = int_to_ptr.vmem [resolvable:$true] %s228_s25 }
  0x1c   :  { %256 = vmatpush3.bf16.msra.mxu0 %v283_v1  ;;  %v287_v5 = vld [vmem:[#allocation5 + $0x28] sm:$0xff]   ;;  %v288_v6 = vld [vmem:[#allocation5 + $0x60] sm:$0xff]   ;;  %v290_v8 = vld [vmem:[#allocation5 + $0x58] sm:$0xff]   ;;  %s338_s26 = scalar_lea.vmem %s229_s25, 128  ;;  %p343_p11 = scmp.lt.s32.totalorder %s229_s25, %s229_s25 }
  0x1d   :  { %257 = vmatprep.subr.bf16.mxu0 %v284_v2  ;;  %v289_v7 = vld [vmem:[#allocation5 + $0x20] sm:$0xff]   ;;  %v291_v9 = vld [vmem:[#allocation5 + $0x18] sm:$0xff]   ;;  %v292_v10 = vld [vmem:[#allocation5 + $0x50] sm:$0xff]   ;;  %p339_p10 = scmp.ne.s32.totalorder %s229_s25, %s338_s26  ;;  %p344_p12 = scmp.lt.s32.totalorder %s338_s26, %s338_s26 }
  0x1e   :  { %v43_v11 = vld [vmem:[#allocation2 + $0x8] sm:$0xff]  ;;  %v293_v13 = vld [vmem:[#allocation5 + $0x10] sm:$0xff]   ;;  %v294_v14 = vld [vmem:[#allocation5 + $0x48] sm:$0xff]  }
  0x1f   :  { %v45_v12 = vpack.c.bf16 %v43_v11, %v43_v11  ;;  %v295_v15 = vld [vmem:[#allocation5 + $0x8] sm:$0xff]   ;;  %v296_v16 = vld [vmem:[#allocation5 + $0x40] sm:$0xff]   ;;  %v42_v18 = vld [vmem:[#allocation2] sm:$0xff]  ;;  %p345_p13 = por %p344_p12, %p343_p11 }
  0x20   :  { %258 = vmatpush3.bf16.msra.mxu0 %v285_v3  ;;  %v297_v17 = vld [vmem:[#allocation5] sm:$0xff]   ;;  %v44_v19 = vpack.c.bf16 %v42_v18, %v42_v18  ;;  %v238_v21 = vld [vmem:[%s403_s2] ss:$0 sm:$0xff] }
  0x21   :  { %259 = vmatprep.subr.bf16.mxu0 %v286_v4  ;;  %213 = vmatprep.mubr.bf16.mxu0 %v45_v12  ;;  %p346_p0 = pnand %p345_p13, %p339_p10 }
  0x24   :  { %260 = vmatpush3.bf16.msra.mxu0 %v287_v5 }
  0x25   :  { %261 = vmatprep.subr.bf16.mxu0 %v288_v6 }
  0x28   :  { %262 = vmatpush3.bf16.msra.mxu0 %v289_v7 }
  0x29   :  { %263 = vmatprep.subr.bf16.mxu0 %v290_v8 }
  0x2c   :  { %264 = vmatpush3.bf16.msra.mxu0 %v291_v9 }
  0x2d   :  { %265 = vmatprep.subr.bf16.mxu0 %v292_v10 }
  0x30   :  { %266 = vmatpush3.bf16.msra.mxu0 %v293_v13 }
  0x31   :  { %267 = vmatprep.subr.bf16.mxu0 %v294_v14 }
  0x34   :  { %268 = vmatpush3.bf16.msra.mxu0 %v295_v15 }
  0x35   :  { %269 = vmatprep.subr.bf16.mxu0 %v296_v16 }
  0x38   :  { %270 = vmatpush3.bf16.msra.mxu0 %v297_v17 }
  0x3b   :  { %214 = vmatmul.mubr.bf16.vlgmr.msra.gmra.mxu0 %v44_v19 }
  0xfb   :  { %v271_v20 = vpop.f32.mrf.mxu0 }
  0xfd   :  { %v272_v22 = vpop.f32.mrf.mxu0 }
  0xfe   :  { %v273_v23 = vadd.f32 %v272_v22, %v271_v20 }
  0xff   :  { %v274_v24 = vpop.f32.mrf.mxu0 }
 0x100   :  { %v216_v25 = vadd.f32 %v273_v23, %v238_v21 }
 0x101   :  { %v275_v26 = vpop.f32.mrf.mxu0 }
 0x102   :  { %221 = vst [vmem:[#allocation7] sm:$0xff] %v216_v25 }
 0x103   :  { %349 = shalt.err (!%p346_p0)
}
 0x104   :  { %231 = dma.vmem_to_hbm [thread:$0]  %s229_s25, 128, %s404_s3, [#allocation4]  }
 0x105   :  { %362 = dma.done.wait [#allocation4], 128  }
 0x106   :  { %363 = vsyncadd [#allocation4], 4294967168 }
 0x107   :  { %235 = vsyncpa [#allocation3], 1 }
 0x108   :  { %236 = vsyncpa [#allocation6], 1 }
 0x109   :  { %237 = vsyncpa [#allocation4], 1 }

</bundles_post_ra>
